<compile_context>
chip_gen: v5e
topology: v5e:2x2
jax: 0.10.0
libtpu: 0.0.40
codegen_flags: <defaults>
</compile_context>

<pallas_src>
import functools

import jax
import jax.numpy as jnp
from jax import lax
from jax.experimental import pallas as pl
from jax.experimental.pallas import tpu as pltpu


def mha_kernel(x_ref, wqkv_ref, bqkv_ref, wout_ref, bout_ref, o_ref,
               kv_ref, ctx_ref, *, nhead, head_dim, scale, tq):
    """One (batch element, query tile) grid step.

    x_ref   : (S, D)     full sequence for the current batch element
    o_ref   : (Tq, D)    output rows for the current query tile
    kv_ref  : (S, 2*D)   VMEM scratch: [K | V] projection, computed at qi == 0
    ctx_ref : (Tq, D)    VMEM scratch: per-head attention outputs (pre out-proj)
    """
    qi = pl.program_id(1)
    d_model = nhead * head_dim
    S = x_ref.shape[0]

    # ---- K/V projection: once per batch element, reused across query tiles.
    @pl.when(qi == 0)
    def _():
        x_full = x_ref[...].astype(jnp.bfloat16)                    # (S, D)
        w_kv = wqkv_ref[:, d_model:].astype(jnp.bfloat16)           # (D, 2D)
        kv = lax.dot_general(x_full, w_kv, (((1,), (0,)), ((), ())),
                             preferred_element_type=jnp.float32)    # (S, 2D) f32
        kv_ref[...] = kv + bqkv_ref[0, d_model:]

    # ---- Q projection for this query tile only; softmax scale folded in once.
    q_start = pl.multiple_of(qi * tq, tq)
    x_q = x_ref[pl.ds(q_start, tq), :].astype(jnp.bfloat16)         # (Tq, D)
    w_q = wqkv_ref[:, :d_model].astype(jnp.bfloat16)                # (D, D)
    q = lax.dot_general(x_q, w_q, (((1,), (0,)), ((), ())),
                        preferred_element_type=jnp.float32)         # (Tq, D) f32
    q = (q + bqkv_ref[0, :d_model]) * scale

    # ---- Causal mask built in-kernel (no (S,S) HBM input).
    row_ids = q_start + lax.broadcasted_iota(jnp.int32, (tq, S), 0)
    col_ids = lax.broadcasted_iota(jnp.int32, (tq, S), 1)
    mask_bias = jnp.where(col_ids <= row_ids,
                          jnp.float32(0.0), jnp.float32(-1e9))      # (Tq, S) f32

    # ---- Per-head attention; contexts land in the (Tq, D) scratch so a single
    # full-depth out-projection matmul can follow.
    for h in range(nhead):
        lo = h * head_dim
        hi = lo + head_dim
        q_h = q[:, lo:hi].astype(jnp.bfloat16)                              # (Tq, hd)
        k_h = kv_ref[:, lo:hi].astype(jnp.bfloat16)                         # (S, hd)
        v_h = kv_ref[:, d_model + lo:d_model + hi].astype(jnp.bfloat16)     # (S, hd)

        # q_h @ k_h^T without materializing a transpose.
        scores = lax.dot_general(q_h, k_h, (((1,), (1,)), ((), ())),
                                 preferred_element_type=jnp.float32)        # (Tq, S)
        scores = scores + mask_bias

        # Numerically stable softmax in f32; normalization deferred past p @ v.
        m = jnp.max(scores, axis=-1, keepdims=True)                         # (Tq, 1)
        p = jnp.exp(scores - m)                                             # unnormalized
        l = jnp.sum(p, axis=-1, keepdims=True)                              # (Tq, 1)

        # TODO(synk): attention-weight dropout (p=0.1 in training) omitted; eval semantics.

        ctx = lax.dot_general(p.astype(jnp.bfloat16), v_h,
                              (((1,), (0,)), ((), ())),
                              preferred_element_type=jnp.float32)           # (Tq, hd)
        ctx_ref[:, lo:hi] = ctx * pl.reciprocal(l, approx=True)

    # ---- Single output projection, contraction depth K = D (full MXU depth).
    out = lax.dot_general(ctx_ref[...].astype(jnp.bfloat16),
                          wout_ref[...].astype(jnp.bfloat16),
                          (((1,), (0,)), ((), ())),
                          preferred_element_type=jnp.float32)               # (Tq, D)
    o_ref[...] = (out + bout_ref[0]).astype(o_ref.dtype)


def multi_head_attention(x, w_qkv, b_qkv, w_out, b_out, *, nhead, tq=None):
    B, S, D = x.shape
    assert D % nhead == 0, "d_model must be divisible by nhead"
    head_dim = D // nhead
    scale = head_dim ** (-0.5)

    # Query-tile size: bounds the per-head (Tq, S) score working set. Must be a
    # multiple of 8 (sublane tile) that divides S, or the full sequence.
    if tq is None:
        tq = S if S <= 256 else 256
    assert S % tq == 0
    num_q_tiles = S // tq

    kernel = functools.partial(mha_kernel, nhead=nhead, head_dim=head_dim,
                               scale=scale, tq=tq)

    def const(shape):
        # Grid-constant block: single VMEM buffer (no double-buffering tax).
        return pl.BlockSpec(shape, lambda b, qi: (0,) * len(shape),
                            pipeline_mode=pl.Buffered(1))

    return pl.pallas_call(
        kernel,
        out_shape=jax.ShapeDtypeStruct((B, S, D), x.dtype),
        grid_spec=pltpu.PrefetchScalarGridSpec(
            num_scalar_prefetch=0,
            grid=(B, num_q_tiles),
            in_specs=[
                pl.BlockSpec((None, S, D), lambda b, qi: (b, 0, 0)),   # x (full seq / batch elem)
                const((D, 3 * D)),                                     # w_qkv
                const((1, 3 * D)),                                     # b_qkv
                const((D, D)),                                         # w_out
                const((1, D)),                                         # b_out
            ],
            out_specs=pl.BlockSpec((None, tq, D), lambda b, qi: (b, qi, 0)),
            scratch_shapes=[
                pltpu.VMEM((S, 2 * D), jnp.float32),   # [K | V] for current batch element
                pltpu.VMEM((tq, D), jnp.float32),      # per-head contexts (pre out-proj)
            ],
        ),
        compiler_params=pltpu.CompilerParams(
            dimension_semantics=("parallel", "arbitrary")),
    )(x, w_qkv, b_qkv, w_out, b_out)


def reference_mha(x, w_qkv, b_qkv, w_out, b_out, mask, *, nhead):
    """Pure-JAX f32 mirror of the PyTorch forward (dropout in eval mode)."""
    B, S, D = x.shape
    head_dim = D // nhead
    scale = head_dim ** (-0.5)
    qkv = x @ w_qkv + b_qkv[0]                                   # (B, S, 3D)
    qkv = qkv.reshape(B, S, 3, nhead, head_dim).transpose(2, 0, 3, 1, 4)
    q, k, v = qkv[0], qkv[1], qkv[2]                             # (B, H, S, hd)
    scores = jnp.einsum('bhqd,bhkd->bhqk', q, k) * scale + mask[None, None]
    attn = jax.nn.softmax(scores, axis=-1)
    out = jnp.einsum('bhqk,bhkd->bhqd', attn, v)
    out = out.transpose(0, 2, 1, 3).reshape(B, S, D)
    return out @ w_out + b_out[0]


if __name__ == "__main__":
    # Small shapes consistent with the module: batch=2, seq=8, d_model=32, nhead=4
    B, S, D, NHEAD = 2, 8, 32, 4

    key = jax.random.PRNGKey(0)
    k_x, k_wqkv, k_bqkv, k_wout, k_bout = jax.random.split(key, 5)

    x = jax.random.normal(k_x, (B, S, D), dtype=jnp.float32)

    # Deterministic parameter init (uniform, PyTorch Linear default scale)
    bound = 1.0 / (D ** 0.5)
    w_qkv = jax.random.uniform(k_wqkv, (D, 3 * D), jnp.float32, -bound, bound)
    b_qkv = jax.random.uniform(k_bqkv, (1, 3 * D), jnp.float32, -bound, bound)
    w_out = jax.random.uniform(k_wout, (D, D), jnp.float32, -bound, bound)
    b_out = jax.random.uniform(k_bout, (1, D), jnp.float32, -bound, bound)

    out = multi_head_attention(x, w_qkv, b_qkv, w_out, b_out, nhead=NHEAD)
    out = jax.block_until_ready(out)

    # Reference uses the same additive causal mask the kernel generates in-kernel.
    causal = jnp.where(
        jnp.tril(jnp.ones((S, S), dtype=bool)), 0.0, -1e9
    ).astype(jnp.float32)
    ref = reference_mha(x, w_qkv, b_qkv, w_out, b_out, causal, nhead=NHEAD)

    assert out.shape == (B, S, D)
    # bf16 MXU operands (f32 accumulation) vs. an all-f32 reference -> loose tolerance.
    assert jnp.allclose(out, ref, atol=2e-2, rtol=2e-2), "mismatch vs reference"

    print("KERNEL_OK")
</pallas_src>

<mosaic_0001>
module attributes {stable_mosaic.version = 11 : i64} {
  func.func @mha_kernel(%arg0: i32, %arg1: i32, %arg2: memref<1x8x32xf32, #tpu.memory_space<vmem>>, %arg3: memref<32x96xf32, #tpu.memory_space<vmem>>, %arg4: memref<1x96xf32, #tpu.memory_space<vmem>>, %arg5: memref<32x32xf32, #tpu.memory_space<vmem>>, %arg6: memref<1x32xf32, #tpu.memory_space<vmem>>, %arg7: memref<1x8x32xf32, #tpu.memory_space<vmem>>, %arg8: memref<8x64xf32, #tpu.memory_space<vmem>>, %arg9: memref<8x32xf32, #tpu.memory_space<vmem>>) attributes {dimension_semantics = [#tpu.dimension_semantics<parallel>, #tpu.dimension_semantics<arbitrary>], iteration_bounds = array<i64: 2, 1>, scalar_prefetch = 0 : i64, scratch_operands = 2 : i64, tpu.core_type = #tpu.core_type<tc>, window_params = [{transform_indices = @transform_0, window_bounds = array<i64: 1, 8, 32>}, {pipeline_mode = #tpu.pipeline_mode<synchronous>, transform_indices = @transform_1, window_bounds = array<i64: 32, 96>}, {pipeline_mode = #tpu.pipeline_mode<synchronous>, transform_indices = @transform_2, window_bounds = array<i64: 1, 96>}, {pipeline_mode = #tpu.pipeline_mode<synchronous>, transform_indices = @transform_3, window_bounds = array<i64: 32, 32>}, {pipeline_mode = #tpu.pipeline_mode<synchronous>, transform_indices = @transform_4, window_bounds = array<i64: 1, 32>}, {transform_indices = @transform_5, window_bounds = array<i64: 1, 8, 32>}]} {
    %c0_i32 = arith.constant 0 : i32
    %0 = arith.cmpi eq, %arg1, %c0_i32 : i32
    %1 = arith.extui %0 : i1 to i32
    %c0_i32_0 = arith.constant 0 : i32
    %2 = arith.cmpi ne, %1, %c0_i32_0 : i32
    scf.if %2 {
      %c0_52 = arith.constant 0 : index
      %c0_53 = arith.constant 0 : index
      %c0_54 = arith.constant 0 : index
      %124 = vector.load %arg2[%c0_52, %c0_53, %c0_54] : memref<1x8x32xf32, #tpu.memory_space<vmem>>, vector<1x8x32xf32>
      %125 = vector.shape_cast %124 : vector<1x8x32xf32> to vector<8x32xf32>
      %126 = arith.truncf %125 : vector<8x32xf32> to vector<8x32xbf16>
      %c0_55 = arith.constant 0 : index
      %c32_56 = arith.constant 32 : index
      %127 = vector.load %arg3[%c0_55, %c32_56] : memref<32x96xf32, #tpu.memory_space<vmem>>, vector<32x64xf32>
      %128 = arith.truncf %127 : vector<32x64xf32> to vector<32x64xbf16>
      %cst_57 = arith.constant dense<0.000000e+00> : vector<8x64xf32>
      %129 = tpu.matmul %126, %128, %cst_57 {dimension_numbers = #tpu.dot_dimension_numbers<[1], [0], [0], [1], [0, 0, 1, 1], [], []>} : vector<8x32xbf16>, vector<32x64xbf16>, vector<8x64xf32> -> vector<8x64xf32>
      %c0_58 = arith.constant 0 : index
      %c32_59 = arith.constant 32 : index
      %130 = vector.load %arg4[%c0_58, %c32_59] : memref<1x96xf32, #tpu.memory_space<vmem>>, vector<1x64xf32>
      %131 = vector.shape_cast %130 : vector<1x64xf32> to vector<64xf32>
      %132 = vector.shape_cast %131 : vector<64xf32> to vector<1x64xf32>
      %133 = vector.broadcast %132 : vector<1x64xf32> to vector<8x64xf32>
      %134 = arith.addf %129, %133 : vector<8x64xf32>
      %c0_60 = arith.constant 0 : index
      %c0_61 = arith.constant 0 : index
      %135 = vector.load %arg8[%c0_60, %c0_61] : memref<8x64xf32, #tpu.memory_space<vmem>>, vector<8x64xf32>
      tpu.vector_store %arg8[%c0_60, %c0_61], %134 {strides = array<i32>} : memref<8x64xf32, #tpu.memory_space<vmem>>, vector<8x64xf32>,
    } else {
    }
    %c8_i32 = arith.constant 8 : i32
    %3 = arith.muli %arg1, %c8_i32 : i32
    %4 = tpu.assume_multiple %3, 8 : i32
    %c0 = arith.constant 0 : index
    %5 = arith.index_cast %4 : i32 to index
    %c0_1 = arith.constant 0 : index
    %6 = vector.load %arg2[%c0, %5, %c0_1] : memref<1x8x32xf32, #tpu.memory_space<vmem>>, vector<1x8x32xf32>
    %7 = vector.shape_cast %6 : vector<1x8x32xf32> to vector<8x32xf32>
    %8 = arith.truncf %7 : vector<8x32xf32> to vector<8x32xbf16>
    %c0_2 = arith.constant 0 : index
    %c0_3 = arith.constant 0 : index
    %9 = vector.load %arg3[%c0_2, %c0_3] : memref<32x96xf32, #tpu.memory_space<vmem>>, vector<32x32xf32>
    %10 = arith.truncf %9 : vector<32x32xf32> to vector<32x32xbf16>
    %cst = arith.constant dense<0.000000e+00> : vector<8x32xf32>
    %11 = tpu.matmul %8, %10, %cst {dimension_numbers = #tpu.dot_dimension_numbers<[1], [0], [0], [1], [0, 0, 1, 1], [], []>} : vector<8x32xbf16>, vector<32x32xbf16>, vector<8x32xf32> -> vector<8x32xf32>
    %c0_4 = arith.constant 0 : index
    %c0_5 = arith.constant 0 : index
    %12 = vector.load %arg4[%c0_4, %c0_5] : memref<1x96xf32, #tpu.memory_space<vmem>>, vector<1x32xf32>
    %13 = vector.shape_cast %12 : vector<1x32xf32> to vector<32xf32>
    %14 = vector.shape_cast %13 : vector<32xf32> to vector<1x32xf32>
    %15 = vector.broadcast %14 : vector<1x32xf32> to vector<8x32xf32>
    %16 = arith.addf %11, %15 : vector<8x32xf32>
    %cst_6 = arith.constant 0.353553385 : f32
    %17 = vector.broadcast %cst_6 : f32 to vector<8x32xf32>
    %18 = arith.mulf %16, %17 : vector<8x32xf32>
    %19 = tpu.iota {dimensions = array<i32: 0>} : vector<8x8xi32>
    %20 = vector.broadcast %4 : i32 to vector<8x8xi32>
    %21 = arith.addi %20, %19 : vector<8x8xi32>
    %22 = tpu.iota {dimensions = array<i32: 1>} : vector<8x8xi32>
    %23 = arith.cmpi sle, %22, %21 : vector<8x8xi32>
    %cst_7 = arith.constant 0.000000e+00 : f32
    %cst_8 = arith.constant -1.000000e+09 : f32
    %24 = vector.broadcast %cst_7 : f32 to vector<8x8xf32>
    %25 = vector.broadcast %cst_8 : f32 to vector<8x8xf32>
    %26 = arith.select %23, %24, %25 : vector<8x8xi1>, vector<8x8xf32>
    %27 = vector.extract_strided_slice %18 {offsets = [0, 0], sizes = [8, 8], strides = [1, 1]} : vector<8x32xf32> to vector<8x8xf32>
    %28 = arith.truncf %27 : vector<8x8xf32> to vector<8x8xbf16>
    %c0_9 = arith.constant 0 : index
    %c0_10 = arith.constant 0 : index
    %29 = vector.load %arg8[%c0_9, %c0_10] : memref<8x64xf32, #tpu.memory_space<vmem>>, vector<8x8xf32>
    %30 = arith.truncf %29 : vector<8x8xf32> to vector<8x8xbf16>
    %c0_11 = arith.constant 0 : index
    %c32 = arith.constant 32 : index
    %31 = vector.load %arg8[%c0_11, %c32] : memref<8x64xf32, #tpu.memory_space<vmem>>, vector<8x8xf32>
    %32 = arith.truncf %31 : vector<8x8xf32> to vector<8x8xbf16>
    %cst_12 = arith.constant dense<0.000000e+00> : vector<8x8xf32>
    %33 = tpu.matmul %28, %30, %cst_12 {dimension_numbers = #tpu.dot_dimension_numbers<[1], [1], [0], [0], [0, 0, 1, 0], [], []>} : vector<8x8xbf16>, vector<8x8xbf16>, vector<8x8xf32> -> vector<8x8xf32>
    %34 = arith.addf %33, %26 : vector<8x8xf32>
    %cst_13 = arith.constant dense<0xFF800000> : vector<8xf32>
    %35 = vector.multi_reduction <maximumf>, %34, %cst_13 [1] : vector<8x8xf32> to vector<8xf32>
    %36 = vector.shape_cast %35 : vector<8xf32> to vector<8x1xf32>
    %37 = vector.broadcast %36 : vector<8x1xf32> to vector<8x8xf32>
    %38 = arith.subf %34, %37 : vector<8x8xf32>
    %39 = math.exp %38 : vector<8x8xf32>
    %cst_14 = arith.constant dense<0.000000e+00> : vector<8xf32>
    %40 = vector.multi_reduction <add>, %39, %cst_14 [1] : vector<8x8xf32> to vector<8xf32>
    %41 = vector.shape_cast %40 : vector<8xf32> to vector<8x1xf32>
    %42 = arith.truncf %39 : vector<8x8xf32> to vector<8x8xbf16>
    %cst_15 = arith.constant dense<0.000000e+00> : vector<8x8xf32>
    %43 = tpu.matmul %42, %32, %cst_15 {dimension_numbers = #tpu.dot_dimension_numbers<[1], [0], [0], [1], [0, 0, 1, 1], [], []>} : vector<8x8xbf16>, vector<8x8xbf16>, vector<8x8xf32> -> vector<8x8xf32>
    %44 = tpu.reciprocal %41 {approx = true} : vector<8x1xf32> -> vector<8x1xf32>
    %45 = vector.broadcast %44 : vector<8x1xf32> to vector<8x8xf32>
    %46 = arith.mulf %43, %45 : vector<8x8xf32>
    %c0_16 = arith.constant 0 : index
    %c0_17 = arith.constant 0 : index
    %47 = vector.load %arg9[%c0_16, %c0_17] : memref<8x32xf32, #tpu.memory_space<vmem>>, vector<8x8xf32>
    tpu.vector_store %arg9[%c0_16, %c0_17], %46 {strides = array<i32>} : memref<8x32xf32, #tpu.memory_space<vmem>>, vector<8x8xf32>,
    %48 = vector.extract_strided_slice %18 {offsets = [0, 8], sizes = [8, 8], strides = [1, 1]} : vector<8x32xf32> to vector<8x8xf32>
    %49 = arith.truncf %48 : vector<8x8xf32> to vector<8x8xbf16>
    %c0_18 = arith.constant 0 : index
    %c8 = arith.constant 8 : index
    %50 = vector.load %arg8[%c0_18, %c8] : memref<8x64xf32, #tpu.memory_space<vmem>>, vector<8x8xf32>
    %51 = arith.truncf %50 : vector<8x8xf32> to vector<8x8xbf16>
    %c0_19 = arith.constant 0 : index
    %c40 = arith.constant 40 : index
    %52 = vector.load %arg8[%c0_19, %c40] : memref<8x64xf32, #tpu.memory_space<vmem>>, vector<8x8xf32>
    %53 = arith.truncf %52 : vector<8x8xf32> to vector<8x8xbf16>
    %cst_20 = arith.constant dense<0.000000e+00> : vector<8x8xf32>
    %54 = tpu.matmul %49, %51, %cst_20 {dimension_numbers = #tpu.dot_dimension_numbers<[1], [1], [0], [0], [0, 0, 1, 0], [], []>} : vector<8x8xbf16>, vector<8x8xbf16>, vector<8x8xf32> -> vector<8x8xf32>
    %55 = arith.addf %54, %26 : vector<8x8xf32>
    %cst_21 = arith.constant dense<0xFF800000> : vector<8xf32>
    %56 = vector.multi_reduction <maximumf>, %55, %cst_21 [1] : vector<8x8xf32> to vector<8xf32>
    %57 = vector.shape_cast %56 : vector<8xf32> to vector<8x1xf32>
    %58 = vector.broadcast %57 : vector<8x1xf32> to vector<8x8xf32>
    %59 = arith.subf %55, %58 : vector<8x8xf32>
    %60 = math.exp %59 : vector<8x8xf32>
    %cst_22 = arith.constant dense<0.000000e+00> : vector<8xf32>
    %61 = vector.multi_reduction <add>, %60, %cst_22 [1] : vector<8x8xf32> to vector<8xf32>
    %62 = vector.shape_cast %61 : vector<8xf32> to vector<8x1xf32>
    %63 = arith.truncf %60 : vector<8x8xf32> to vector<8x8xbf16>
    %cst_23 = arith.constant dense<0.000000e+00> : vector<8x8xf32>
    %64 = tpu.matmul %63, %53, %cst_23 {dimension_numbers = #tpu.dot_dimension_numbers<[1], [0], [0], [1], [0, 0, 1, 1], [], []>} : vector<8x8xbf16>, vector<8x8xbf16>, vector<8x8xf32> -> vector<8x8xf32>
    %65 = tpu.reciprocal %62 {approx = true} : vector<8x1xf32> -> vector<8x1xf32>
    %66 = vector.broadcast %65 : vector<8x1xf32> to vector<8x8xf32>
    %67 = arith.mulf %64, %66 : vector<8x8xf32>
    %c0_24 = arith.constant 0 : index
    %c8_25 = arith.constant 8 : index
    %68 = vector.load %arg9[%c0_24, %c8_25] : memref<8x32xf32, #tpu.memory_space<vmem>>, vector<8x8xf32>
    tpu.vector_store %arg9[%c0_24, %c8_25], %67 {strides = array<i32>} : memref<8x32xf32, #tpu.memory_space<vmem>>, vector<8x8xf32>,
    %69 = vector.extract_strided_slice %18 {offsets = [0, 16], sizes = [8, 8], strides = [1, 1]} : vector<8x32xf32> to vector<8x8xf32>
    %70 = arith.truncf %69 : vector<8x8xf32> to vector<8x8xbf16>
    %c0_26 = arith.constant 0 : index
    %c16 = arith.constant 16 : index
    %71 = vector.load %arg8[%c0_26, %c16] : memref<8x64xf32, #tpu.memory_space<vmem>>, vector<8x8xf32>
    %72 = arith.truncf %71 : vector<8x8xf32> to vector<8x8xbf16>
    %c0_27 = arith.constant 0 : index
    %c48 = arith.constant 48 : index
    %73 = vector.load %arg8[%c0_27, %c48] : memref<8x64xf32, #tpu.memory_space<vmem>>, vector<8x8xf32>
    %74 = arith.truncf %73 : vector<8x8xf32> to vector<8x8xbf16>
    %cst_28 = arith.constant dense<0.000000e+00> : vector<8x8xf32>
    %75 = tpu.matmul %70, %72, %cst_28 {dimension_numbers = #tpu.dot_dimension_numbers<[1], [1], [0], [0], [0, 0, 1, 0], [], []>} : vector<8x8xbf16>, vector<8x8xbf16>, vector<8x8xf32> -> vector<8x8xf32>
    %76 = arith.addf %75, %26 : vector<8x8xf32>
    %cst_29 = arith.constant dense<0xFF800000> : vector<8xf32>
    %77 = vector.multi_reduction <maximumf>, %76, %cst_29 [1] : vector<8x8xf32> to vector<8xf32>
    %78 = vector.shape_cast %77 : vector<8xf32> to vector<8x1xf32>
    %79 = vector.broadcast %78 : vector<8x1xf32> to vector<8x8xf32>
    %80 = arith.subf %76, %79 : vector<8x8xf32>
    %81 = math.exp %80 : vector<8x8xf32>
    %cst_30 = arith.constant dense<0.000000e+00> : vector<8xf32>
    %82 = vector.multi_reduction <add>, %81, %cst_30 [1] : vector<8x8xf32> to vector<8xf32>
    %83 = vector.shape_cast %82 : vector<8xf32> to vector<8x1xf32>
    %84 = arith.truncf %81 : vector<8x8xf32> to vector<8x8xbf16>
    %cst_31 = arith.constant dense<0.000000e+00> : vector<8x8xf32>
    %85 = tpu.matmul %84, %74, %cst_31 {dimension_numbers = #tpu.dot_dimension_numbers<[1], [0], [0], [1], [0, 0, 1, 1], [], []>} : vector<8x8xbf16>, vector<8x8xbf16>, vector<8x8xf32> -> vector<8x8xf32>
    %86 = tpu.reciprocal %83 {approx = true} : vector<8x1xf32> -> vector<8x1xf32>
    %87 = vector.broadcast %86 : vector<8x1xf32> to vector<8x8xf32>
    %88 = arith.mulf %85, %87 : vector<8x8xf32>
    %c0_32 = arith.constant 0 : index
    %c16_33 = arith.constant 16 : index
    %89 = vector.load %arg9[%c0_32, %c16_33] : memref<8x32xf32, #tpu.memory_space<vmem>>, vector<8x8xf32>
    tpu.vector_store %arg9[%c0_32, %c16_33], %88 {strides = array<i32>} : memref<8x32xf32, #tpu.memory_space<vmem>>, vector<8x8xf32>,
    %90 = vector.extract_strided_slice %18 {offsets = [0, 24], sizes = [8, 8], strides = [1, 1]} : vector<8x32xf32> to vector<8x8xf32>
    %91 = arith.truncf %90 : vector<8x8xf32> to vector<8x8xbf16>
    %c0_34 = arith.constant 0 : index
    %c24 = arith.constant 24 : index
    %92 = vector.load %arg8[%c0_34, %c24] : memref<8x64xf32, #tpu.memory_space<vmem>>, vector<8x8xf32>
    %93 = arith.truncf %92 : vector<8x8xf32> to vector<8x8xbf16>
    %c0_35 = arith.constant 0 : index
    %c56 = arith.constant 56 : index
    %94 = vector.load %arg8[%c0_35, %c56] : memref<8x64xf32, #tpu.memory_space<vmem>>, vector<8x8xf32>
    %95 = arith.truncf %94 : vector<8x8xf32> to vector<8x8xbf16>
    %cst_36 = arith.constant dense<0.000000e+00> : vector<8x8xf32>
    %96 = tpu.matmul %91, %93, %cst_36 {dimension_numbers = #tpu.dot_dimension_numbers<[1], [1], [0], [0], [0, 0, 1, 0], [], []>} : vector<8x8xbf16>, vector<8x8xbf16>, vector<8x8xf32> -> vector<8x8xf32>
    %97 = arith.addf %96, %26 : vector<8x8xf32>
    %cst_37 = arith.constant dense<0xFF800000> : vector<8xf32>
    %98 = vector.multi_reduction <maximumf>, %97, %cst_37 [1] : vector<8x8xf32> to vector<8xf32>
    %99 = vector.shape_cast %98 : vector<8xf32> to vector<8x1xf32>
    %100 = vector.broadcast %99 : vector<8x1xf32> to vector<8x8xf32>
    %101 = arith.subf %97, %100 : vector<8x8xf32>
    %102 = math.exp %101 : vector<8x8xf32>
    %cst_38 = arith.constant dense<0.000000e+00> : vector<8xf32>
    %103 = vector.multi_reduction <add>, %102, %cst_38 [1] : vector<8x8xf32> to vector<8xf32>
    %104 = vector.shape_cast %103 : vector<8xf32> to vector<8x1xf32>
    %105 = arith.truncf %102 : vector<8x8xf32> to vector<8x8xbf16>
    %cst_39 = arith.constant dense<0.000000e+00> : vector<8x8xf32>
    %106 = tpu.matmul %105, %95, %cst_39 {dimension_numbers = #tpu.dot_dimension_numbers<[1], [0], [0], [1], [0, 0, 1, 1], [], []>} : vector<8x8xbf16>, vector<8x8xbf16>, vector<8x8xf32> -> vector<8x8xf32>
    %107 = tpu.reciprocal %104 {approx = true} : vector<8x1xf32> -> vector<8x1xf32>
    %108 = vector.broadcast %107 : vector<8x1xf32> to vector<8x8xf32>
    %109 = arith.mulf %106, %108 : vector<8x8xf32>
    %c0_40 = arith.constant 0 : index
    %c24_41 = arith.constant 24 : index
    %110 = vector.load %arg9[%c0_40, %c24_41] : memref<8x32xf32, #tpu.memory_space<vmem>>, vector<8x8xf32>
    tpu.vector_store %arg9[%c0_40, %c24_41], %109 {strides = array<i32>} : memref<8x32xf32, #tpu.memory_space<vmem>>, vector<8x8xf32>,
    %c0_42 = arith.constant 0 : index
    %c0_43 = arith.constant 0 : index
    %111 = vector.load %arg9[%c0_42, %c0_43] : memref<8x32xf32, #tpu.memory_space<vmem>>, vector<8x32xf32>
    %112 = arith.truncf %111 : vector<8x32xf32> to vector<8x32xbf16>
    %c0_44 = arith.constant 0 : index
    %c0_45 = arith.constant 0 : index
    %113 = vector.load %arg5[%c0_44, %c0_45] : memref<32x32xf32, #tpu.memory_space<vmem>>, vector<32x32xf32>
    %114 = arith.truncf %113 : vector<32x32xf32> to vector<32x32xbf16>
    %cst_46 = arith.constant dense<0.000000e+00> : vector<8x32xf32>
    %115 = tpu.matmul %112, %114, %cst_46 {dimension_numbers = #tpu.dot_dimension_numbers<[1], [0], [0], [1], [0, 0, 1, 1], [], []>} : vector<8x32xbf16>, vector<32x32xbf16>, vector<8x32xf32> -> vector<8x32xf32>
    %c0_47 = arith.constant 0 : index
    %c0_48 = arith.constant 0 : index
    %116 = vector.load %arg6[%c0_47, %c0_48] : memref<1x32xf32, #tpu.memory_space<vmem>>, vector<1x32xf32>
    %117 = vector.shape_cast %116 : vector<1x32xf32> to vector<32xf32>
    %118 = vector.shape_cast %117 : vector<32xf32> to vector<1x32xf32>
    %119 = vector.broadcast %118 : vector<1x32xf32> to vector<8x32xf32>
    %120 = arith.addf %115, %119 : vector<8x32xf32>
    %c0_49 = arith.constant 0 : index
    %c0_50 = arith.constant 0 : index
    %c0_51 = arith.constant 0 : index
    %121 = vector.load %arg7[%c0_49, %c0_50, %c0_51] : memref<1x8x32xf32, #tpu.memory_space<vmem>>, vector<1x8x32xf32>
    %122 = vector.shape_cast %121 : vector<1x8x32xf32> to vector<8x32xf32>
    %123 = vector.shape_cast %120 : vector<8x32xf32> to vector<1x8x32xf32>
    tpu.vector_store %arg7[%c0_49, %c0_50, %c0_51], %123 {strides = array<i32>} : memref<1x8x32xf32, #tpu.memory_space<vmem>>, vector<1x8x32xf32>,
    return
  }
  func.func @transform_0(%arg0: i32, %arg1: i32) -> (i32, i32, i32) {
    %c0_i32 = arith.constant 0 : i32
    %c0_i32_0 = arith.constant 0 : i32
    %c0_i32_1 = arith.constant 0 : i32
    return %arg0, %c0_i32, %c0_i32_0 : i32, i32, i32
  }
  func.func @transform_1(%arg0: i32, %arg1: i32) -> (i32, i32) {
    %c0_i32 = arith.constant 0 : i32
    %c0_i32_0 = arith.constant 0 : i32
    %c0_i32_1 = arith.constant 0 : i32
    return %c0_i32, %c0_i32_0 : i32, i32
  }
  func.func @transform_2(%arg0: i32, %arg1: i32) -> (i32, i32) {
    %c0_i32 = arith.constant 0 : i32
    %c0_i32_0 = arith.constant 0 : i32
    %c0_i32_1 = arith.constant 0 : i32
    return %c0_i32, %c0_i32_0 : i32, i32
  }
  func.func @transform_3(%arg0: i32, %arg1: i32) -> (i32, i32) {
    %c0_i32 = arith.constant 0 : i32
    %c0_i32_0 = arith.constant 0 : i32
    %c0_i32_1 = arith.constant 0 : i32
    return %c0_i32, %c0_i32_0 : i32, i32
  }
  func.func @transform_4(%arg0: i32, %arg1: i32) -> (i32, i32) {
    %c0_i32 = arith.constant 0 : i32
    %c0_i32_0 = arith.constant 0 : i32
    %c0_i32_1 = arith.constant 0 : i32
    return %c0_i32, %c0_i32_0 : i32, i32
  }
  func.func @transform_5(%arg0: i32, %arg1: i32) -> (i32, i32, i32) {
    %c0_i32 = arith.constant 0 : i32
    %c0_i32_0 = arith.constant 0 : i32
    return %arg0, %arg1, %c0_i32 : i32, i32, i32
  }
}

</mosaic_0001>

<bundles_post_ra>
// kernel: tpu_custom_call.1
= control target key start
LH: loop header
LB: loop body
LE: loop exit
PB: predicated region body
PF: predicated region fallthrough
CT: control target
= control target key end

     0   :  { %10 = vsyncpa [#allocation5], 0  ;;  %s1345_s0 = inlined_call_operand.hbm [shape: f32[2,8,32], index: 0, kind: input, shape index: {}]   ;;  %s1346_s1 = inlined_call_operand.hbm [shape: f32[32,96], index: 1, kind: input, shape index: {}]   ;;  %s1347_s2 = inlined_call_operand.vmem [shape: f32[1,96], index: 2, kind: input, shape index: {}]   ;;  %s1348_s3 = inlined_call_operand.hbm [shape: f32[32,32], index: 3, kind: input, shape index: {}]   ;;  %s1349_s4 = inlined_call_operand.vmem [shape: f32[1,32], index: 4, kind: input, shape index: {}]   ;;  %s1350_s5 = inlined_call_operand.hbm [shape: f32[2,8,32], index: 5, kind: output, shape index: {}]  }
   0x1   :  { %12 = vsyncpa [#allocation5 + $0x1], 0 }
   0x2   :  { %13 = vsyncpa [#allocation8], 0 }
   0x3   :  { %14 = vsyncpa [#allocation6], 0 }
   0x4   :  { %16 = vsyncpa [#allocation6 + $0x1], 0  ;;  %s1142_s18 = smov 0   ;;  %s1144_s19 = smov 0  }
   0x5   :  { %s1146_s20 = smov 0   ;;  %s1148_s21 = smov 0  }
   0x6   :  { %s1150_s22 = smov 0   ;;  %s1152_s23 = smov 0  }
   0x7 LB: > { %s776_s24 = sadd.s32 4294967295, %s1095_s23   ;;  %p778_p0 = scmp.ge.s32.totalorder %s1095_s23, 1  ;;  %s1095_s23 = sphi %s1152_s23, %s22_s23   ;;  %s1091_s22 = sphi %s1150_s22, %s1360_s22   ;;  %s1087_s21 = sphi %s1148_s21, %s1359_s21   ;;  %s1083_s20 = sphi %s1146_s20, %s1358_s20   ;;  %s1079_s19 = sphi %s1144_s19, %s1357_s19   ;;  %s1075_s18 = sphi %s1142_s18, %s1356_s18  }
   0x8   : > { %p1176_p1 = scmp.eq.s32.totalorder %s776_s24, 0  ;;  %p177_p2 = scmp.lt.s32.totalorder %s1095_s23, 3 }
   0x9   : > { %s188_s28 = sshll.u32 %s1346_s1, 4  ;;  %s1097_s30 = smov [#allocation7]   ;;  %s189_s28 = int_to_ptr.hbm [resolvable:$true] %s188_s28 }
   0xa   : > { %p1184_p3 = pnand %p778_p0, %p177_p2  ;;  %s190_s6 = sshll.u32 %s1097_s30, 4  ;;  %s191_s6 = int_to_ptr.vmem [resolvable:$true] %s190_s6 }
   0xb   : > { %p781_p6 = scmp.ge.s32.totalorder %s1095_s23, 2  ;;  %s205_s9 = sshll.u32 %s1348_s3, 4  ;;  %s206_s9 = int_to_ptr.hbm [resolvable:$true] %s205_s9 }
   0xc   : > { %p816_p4 = pneg %p1184_p3  ;;  %s1098_s10 = smov 128  }
   0xd   : > { %s1099_s11 = smov 8   ;;  %s1100_s12 = smov [#allocation9]  }
   0xe   : > { %p817_p5 = pnand %p816_p4, %p1176_p1  ;;  %s207_s13 = sshll.u32 %s1100_s12, 4  ;;  %s208_s13 = int_to_ptr.vmem [resolvable:$true] %s207_s13 }
   0xf   : > { %s34_s14 = sadd.s32 1, %s1091_s22  ;;  %s777_s15 = sadd.s32 4294967294, %s1095_s23  }
  0x10   : > { %819 = dma.hbm_to_vmem [thread:$0]  (!%p817_p5), %s189_s28, 512, %s191_s6, [#allocation8], %s1098_s10, %s1098_s10, %s1099_s11  }
  0x11   : > { %822 = dma.hbm_to_vmem [thread:$0]  (!%p817_p5), %s206_s9, 512, %s208_s13, [#allocation8], %s1098_s10, %s1098_s10, %s1099_s11  }
  0x12   : > { %p36_p7 = scmp.ge.s32.totalorder %s34_s14, 2  ;;  %s41_s16 = sadd.s32 1, %s1083_s20 }
  0x13   : > { %p48_p8 = scmp.ne.s32.totalorder %s1083_s20, %s1079_s19  ;;  %p49_p9 = scmp.eq.s32.totalorder %s1095_s23, 0 }
  0x14   : > { %s1362_s14 = smov (%p36_p7, %s34_s14), 0  ;;  %p54_p10 = scmp.ne.s32.totalorder %s1079_s19, %s1075_s18 }
  0x15   : > { %s38_s17 = ssub.s32 %s1091_s22, %s1362_s14  ;;  %p164_p11 = scmp.eq.s32.totalorder %s776_s24, 1 }
  0x16   : > { %p39_p12 = scmp.eq.s32.totalorder %s38_s17, 0  ;;  %p1212_p13 = por %p1176_p1, %p54_p10 }
  0x17   : > { %p1216_p0 = por %p164_p11, %p48_p8  ;;  %p170_p2 = scmp.eq.s32.totalorder %s777_s15, 1 }
  0x18   : > { %s1221_s28 = scalar_select %p39_p12, %s1083_s20, %s41_s16  }
  0x19   : > { %p50_p4 = por %p49_p9, %p48_p8  ;;  %p1223_p5 = por %p170_p2, %p54_p10 }
  0x1a   : > { %s224_s6 = sand.u32 1, %s1083_s20   ;;  %s783_s24 = sshll.u32 %s1091_s22, 3 }
  0x1b   : > { %p833_p7 = scmp.lt.s32.totalorder %s1095_s23, 2  ;;  %s782_s7 = sshll.u32 %s224_s6, 3 }
  0x1c   : > { %s232_s10 = scalar_lea.hbm %s1345_s0, %s783_s24  ;;  %s228_s12 = scalar_lea.vmem [#allocation4], %s782_s7 }
  0x1d   : > { %s234_s11 = sshll.u32 %s232_s10, 4  ;;  %s236_s13 = sshll.u32 %s228_s12, 4  ;;  %s235_s11 = int_to_ptr.hbm [resolvable:$true] %s234_s11  ;;  %s237_s13 = int_to_ptr.vmem [resolvable:$true] %s236_s13 }
  0x1e   : > { %p824_p11 = pnand %p833_p7, %p50_p4  ;;  %s225_s15 = scalar_lea.sflag [#allocation5], %s224_s6 }
  0x1f   : > { %245 = sbr.rel (%p1184_p3) target bundleno = 1238 (0x4d6), region = 40  ;;  %s1236_s16 = sand.u32 (!%p1184_p3), 1, %s1079_s19  }
  0x20   : > { %826 = dma.hbm_to_vmem [thread:$0]  (!%p824_p11), %s235_s11, 128, %s237_s13, %s225_s15  }
  0x21   : > { %s785_s17 = sshll.u32 (!%p1184_p3), %s1236_s16, 3  ;;  %s248_s24 = scalar_lea.sflag (!%p1184_p3), [#allocation5], %s1236_s16 }
  0x22   : > { %s251_s7 = scalar_lea.vmem (!%p1184_p3), [#allocation4], %s785_s17 }
  0x24   : > { %1062 = dma.done.wait (%p1212_p13), %s248_s24, 128  }
  0x25   : > { %1064 = vsyncadd (%p1212_p13), %s248_s24, 4294967168 }
  0x26   : > { %1066 = dma.done.wait (%p1176_p1), [#allocation8], 1024  }
  0x27   : > { %1068 = vsyncadd (%p1176_p1), [#allocation8], 4294966272  ;;  %v298_v0 = vld [vmem:[#allocation7 + $0x10] sm:$0xff]  ;;  %v299_v1 = vld [vmem:[#allocation7 + $0x18] sm:$0xff]  ;;  %s1101_s29 = smov 96   ;;  %vm316_vm0 = vcmask 261120   ;;  %v367_v31 = vlaneseq }
  0x28   : > { %v301_v2 = vpack.c.bf16 %v299_v1, %v298_v0  ;;  %v296_v3 = vld [vmem:[#allocation7] sm:$0xff]  ;;  %v297_v4 = vld [vmem:[#allocation7 + $0x8] sm:$0xff]  ;;  %v337_v6 = vld [vmem:[%s251_s7] sm:$0xff]  ;;  %s1102_s9 = smov 120   ;;  %vm333_vm1 = vcmask 523264   ;;  %vm378_vm2 = vcmask 64512  }
  0x29   : > { %v300_v5 = vpack.c.bf16 %v297_v4, %v296_v3  ;;  %v338_v7 = vpack.c.bf16 %v337_v6, %v337_v6  ;;  %v900_v8 = vld [vmem:[%s1347_s2] ss:$0 sm:$0xff]  ;;  %s1103_s10 = smov 104   ;;  %s1104_s11 = smov 112   ;;  %vm414_vm3 = vcmask 1043456   ;;  %v368_v32 = vshrl.u32 %v367_v31, 7 }
  0x2a   : > { %309 = vrot.lane.b32.xlu0 %v301_v2, %s1101_s29  ;;  %359 = vmatpush.bf16.msra.mxu1 %v301_v2  ;;  %v901_v11 = vld [vmem:[%s1347_s2] ss:$0 sm:$0xff]  ;;  %v372_v33 = vand.u32 127, %v367_v31  ;;  %v1105_v34 = vmov -1e+09   ;;  %s1106_s12 = smov 88  }
  0x2b   : > { %313 = vrot.lane.b32.xlu1 %v900_v8, %s1101_s29  ;;  %s1107_s13 = smov 80   ;;  %s1108_s15 = smov 72   ;;  %vm498_vm5 = vcmask 130112   ;;  %vm563_vm6 = vcmask 195712   ;;  %vm628_vm7 = vcmask 261312  }
  0x2c   : > { %vm373_vm4 = vcmp.le.s32.totalorder %v372_v33, %v368_v32  ;;  %s1109_s24 = smov 16   ;;  %s1110_s7 = smov 8  }
  0x2d   : > { %v374_v35 = vsel %vm373_vm4, 0.0, %v1105_v34  ;;  %s801_s25 = sshll.u32 %s1087_s21, 3  ;;  %s660_s21 = scalar_lea.sflag [#allocation6], %s1236_s16 }
  0x2e   : > { %360 = vmatpush.bf16.msra.mxu1 %v300_v5  ;;  %s671_s8 = scalar_lea.hbm %s1350_s5, %s801_s25 }
  0x31   : > { %790 = vmatmul.msk.bf16.vlgmr.msra.gmra.mxu1 %vm316_vm0, %v338_v7 }
  0x32   : > { %307 = vrot.lane.b32.xlu0 %v300_v5, %s1101_s29 }
  0x9c   : > { %v310_v9 = vpop.permute.xlu0 %309 }
  0x9d   : > { %326 = vmatpush.bf16.msra.mxu0 %v310_v9  ;;  %v314_v17 = vpop.permute.xlu1 %313 }
  0xa4   : > { %v308_v10 = vpop.permute.xlu0 %307 }
  0xa5   : > { %327 = vmatpush.bf16.msra.mxu0 %v308_v10 }
  0xa8   : > { %789 = vmatmul.msk.bf16.vlgmr.msra.gmra.mxu0 %vm316_vm0, %v338_v7 }
  0xae   : > { %v362_v12 = vpop.f32.mrf.mxu1 }
  0xaf   : > { %v363_v13 = vadd.f32 %v901_v11, %v362_v12 }
  0xb1   : > { %v366_v14 = vmul.f32 0.35355338, %v363_v13 }
  0xb3   : > { %v375_v15 = vpack.c.bf16 %v366_v14, %v366_v14 }
  0xb5   : > { %437 = vrot.lane.b32.xlu0 %v375_v15, %s1102_s9 }
  0xb6   : > { %v364_v16 = vpop.f32.mrf.mxu1 }
 0x125   : > { %v329_v18 = vpop.f32.mrf.mxu0 }
 0x126   : > { %v330_v19 = vadd.f32 %v329_v18, %v314_v17 }
 0x127   : > { %v438_v45 = vpop.permute.xlu0 %437 }
 0x128   : > { %334 = vst.msk [vmem:[#allocation2] sm:$0xff] %vm333_vm1, %v330_v19 }
 0x12d   : > { %v331_v20 = vpop.f32.mrf.mxu0 }
 0x12f   : > { %v565_v21 = vld [vmem:[#allocation2] sm:$0xff] }
 0x130   : > { %v1261_v22 = vpack.c.bf16 %v565_v21, %v565_v21 }
 0x132   : > { %570 = vrot.lane.b32.xlu0 %v1261_v22, %s1103_s10  ;;  %409 = vrot.lane.b32.xlu2 %v1261_v22, %s1101_s29  ;;  %v383_v23 = vsel %vm378_vm2, %v1261_v22, 0  ;;  %s1111_s29 = smov 24  }
 0x133   : > { %392 = vmatpush.bf16.xpose.msra.mxu2 %v383_v23 }
 0x13a   : > { %567 = vrot.lane.b32.xlu0 %v375_v15, %s1103_s10  ;;  %440 = vrot.lane.b32.xlu2 %v1261_v22, %s1102_s9 }
 0x13b   : > { %791 = vmatmul.msk.bf16.vlgmr.msra.gmra.mxu2 %vm378_vm2, %v375_v15 }
 0x142   : > { %505 = vrot.lane.b32.xlu2 %v1261_v22, %s1104_s11 }
 0x14a   : > { %502 = vrot.lane.b32.xlu2 %v375_v15, %s1104_s11  ;;  %s288_s11 = scalar_lea.vmem [#allocation10], %s785_s17  ;;  %s1029_s17 = scalar_lea.hbm %s1350_s5, 16 }
 0x18c   : > { %v410_v24 = vpop.permute.xlu2 %409 }
 0x18d   : > { %v416_v25 = vsel %vm414_vm3, %v410_v24, 0 }
 0x18e   : > { %425 = vmatpush.bf16.msra.mxu3 %v416_v25 }
 0x194   : > { %v441_v26 = vpop.permute.xlu2 %440 }
 0x195   : > { %v446_v27 = vsel %vm378_vm2, %v441_v26, 0 }
 0x196   : > { %455 = vmatpush.bf16.xpose.msrb.mxu3 %v446_v27 }
 0x19c   : > { %v506_v28 = vpop.permute.xlu2 %505 }
 0x19d   : > { %v511_v29 = vsel %vm378_vm2, %v506_v28, 0 }
 0x19e   : > { %520 = vmatpush.bf16.xpose.msrb.mxu1 %v511_v29 }
 0x1a4   : > { %v503_v30 = vpop.permute.xlu2 %502  ;;  %v571_v49 = vpop.permute.xlu0 %570 }
 0x1a5   : > { %795 = vmatmul.msk.bf16.vlgmr.msrb.gmra.mxu1 %vm378_vm2, %v503_v30  ;;  %v576_v51 = vsel %vm378_vm2, %v571_v49, 0 }
 0x1ac   : > { %v568_v56 = vpop.permute.xlu0 %567 }
 0x1be   : > { %v394_v36 = vpop.f32.mrf.mxu2 }
 0x1bf   : > { %v395_v37 = vadd.f32 %v394_v36, %v374_v35 }
 0x1c1   : > { %v398_v38 = vsel %vm378_vm2, %v395_v37, -inf }
 0x1c2   : > { %399 = vmax.xlane.f32.xlu1 %v398_v38 }
 0x1c6   : > { %v396_v39 = vpop.f32.mrf.mxu2 }
 0x1db   : > { %471 = vrot.lane.b32.xlu1 %v1261_v22, %s1106_s12  ;;  %s673_s12 = sshll.u32 %s288_s11, 4  ;;  %s674_s12 = int_to_ptr.vmem [resolvable:$true] %s673_s12 }
 0x1e3   : > { %536 = vrot.lane.b32.xlu1 %v1261_v22, %s1107_s13  ;;  %s675_s13 = sshll.u32 %s671_s8, 4  ;;  %s676_s13 = int_to_ptr.hbm [resolvable:$true] %s675_s13 }
 0x222   : > { %v522_v40 = vpop.f32.mrf.mxu1 }
 0x223   : > { %v523_v41 = vadd.f32 %v522_v40, %v374_v35 }
 0x225   : > { %v526_v42 = vsel %vm378_vm2, %v523_v41, -inf }
 0x226   : > { %527 = vmax.xlane.f32.xlu0 %v526_v42  ;;  %v634_v42 = vld [vmem:[#allocation9 + $0x10] sm:$0xff] }
 0x22a   : > { %v524_v43 = vpop.f32.mrf.mxu1 }
 0x22b   : > { %v635_v43 = vld [vmem:[#allocation9 + $0x18] sm:$0xff] }
 0x235   : > { %v400_v44 = vpop.xlane.xlu1 %399 }
 0x236   : > { %v401_v46 = vsub.f32 %v395_v37, %v400_v44  ;;  %v632_v44 = vld [vmem:[#allocation9] sm:$0xff] }
 0x238   : > { %v402_v47 = vmul.f32 1.442695, %v401_v46  ;;  %v633_v46 = vld [vmem:[#allocation9 + $0x8] sm:$0xff] }
 0x23a   : > { %903 = vpow2.f32 %v402_v47  ;;  %v636_v47 = vpack.c.bf16 %v633_v46, %v632_v44 }
 0x240   : > { %v904_v48 = vpop.eup %903 }
 0x241   : > { %v407_v50 = vpack.c.bf16 %v904_v48, %v904_v48  ;;  %v404_v25 = vsel %vm378_vm2, %v904_v48, 0.0 }
 0x243   : > { %792 = vmatmul.msk.bf16.vlgmr.msra.gmra.mxu3 %vm378_vm2, %v407_v50 }
 0x244   : > { %585 = vmatpush.bf16.xpose.msra.mxu3 %v576_v51 }
 0x24d   : > { %v472_v52 = vpop.permute.xlu1 %471 }
 0x24e   : > { %v477_v53 = vsel %vm414_vm3, %v472_v52, 0 }
 0x24f   : > { %486 = vmatpush.bf16.msrb.mxu0 %v477_v53  ;;  %v902_v53 = vld [vmem:[%s1349_s4] ss:$0 sm:$0xff] }
 0x253   : > { %793 = vmatmul.msk.bf16.vlgmr.msrb.gmra.mxu3 %vm378_vm2, %v438_v45  ;;  %v637_v45 = vpack.c.bf16 %v635_v43, %v634_v42 }
 0x255   : > { %v537_v54 = vpop.permute.xlu1 %536  ;;  %651 = vmatpush.bf16.msra.mxu1 %v637_v45 }
 0x256   : > { %v542_v55 = vsel %vm414_vm3, %v537_v54, 0 }
 0x257   : > { %551 = vmatpush.bf16.msrb.mxu2 %v542_v55 }
 0x259   : > { %652 = vmatpush.bf16.msra.mxu1 %v636_v47 }
 0x263   : > { %797 = vmatmul.msk.bf16.vlgmr.msra.gmra.mxu3 %vm378_vm2, %v568_v56 }
 0x299   : > { %v528_v57 = vpop.xlane.xlu0 %527 }
 0x29a   : > { %v529_v58 = vsub.f32 %v523_v41, %v528_v57 }
 0x29c   : > { %v530_v59 = vmul.f32 1.442695, %v529_v58 }
 0x29e   : > { %905 = vpow2.f32 %v530_v59 }
 0x2a4   : > { %v906_v60 = vpop.eup %905 }
 0x2a5   : > { %v532_v61 = vsel %vm378_vm2, %v906_v60, 0.0  ;;  %v535_v62 = vpack.c.bf16 %v906_v60, %v906_v60 }
 0x2a6   : > { %533 = vadd.xlane.f32.xlu1 %v532_v61 }
 0x2a7   : > { %796 = vmatmul.msk.bf16.vlgmr.msrb.gmra.mxu2 %vm378_vm2, %v535_v62 }
 0x2c6   : > { %v1287_v63 = vpop.f32.mrf.mxu3 }
 0x2ce   : > { %v429_v0 = vpop.f32.mrf.mxu3 }
 0x2d6   : > { %v457_v1 = vpop.f32.mrf.mxu3 }
 0x2d7   : > { %v458_v2 = vadd.f32 %v457_v1, %v374_v35 }
 0x2d9   : > { %v461_v3 = vsel %vm378_vm2, %v458_v2, -inf }
 0x2da   : > { %462 = vmax.xlane.f32.xlu2 %v461_v3 }
 0x2de   : > { %v459_v4 = vpop.f32.mrf.mxu3 }
 0x2e6   : > { %v587_v5 = vpop.f32.mrf.mxu3 }
 0x2e7   : > { %v588_v6 = vadd.f32 %v587_v5, %v374_v35 }
 0x2e9   : > { %v591_v7 = vsel %vm378_vm2, %v588_v6, -inf }
 0x2ea   : > { %592 = vmax.xlane.f32.xlu2 %v591_v7 }
 0x2ee   : > { %v589_v8 = vpop.f32.mrf.mxu3 }
 0x302   : > { %601 = vrot.lane.b32.xlu2 %v1261_v22, %s1108_s15  ;;  %s1023_s15 = sshra.s32 %s676_s13, 4  ;;  %s1024_s15 = int_to_ptr.hbm [resolvable:$true] %s1023_s15 }
 0x303   : > { %p1030_p9 = scmp.lt.s32.totalorder %s1024_s15, %s1350_s5 }
 0x319   : > { %v534_v26 = vpop.xlane.xlu1 %533 }
 0x32a   : > { %v553_v9 = vpop.f32.mrf.mxu2 }
 0x332   : > { %v555_v10 = vpop.f32.mrf.mxu2 }
 0x34d   : > { %v463_v11 = vpop.xlane.xlu2 %462 }
 0x34e   : > { %v464_v12 = vsub.f32 %v458_v2, %v463_v11 }
 0x350   : > { %v465_v13 = vmul.f32 1.442695, %v464_v12 }
 0x352   : > { %907 = vpow2.f32 %v465_v13 }
 0x358   : > { %v908_v14 = vpop.eup %907 }
 0x359   : > { %v467_v15 = vsel %vm378_vm2, %v908_v14, 0.0  ;;  %v470_v16 = vpack.c.bf16 %v908_v14, %v908_v14 }
 0x35a   : > { %468 = vadd.xlane.f32.xlu0 %v467_v15 }
 0x35b   : > { %794 = vmatmul.msk.bf16.vlgmr.msrb.gmra.mxu0 %vm378_vm2, %v470_v16 }
 0x35d   : > { %v593_v17 = vpop.xlane.xlu2 %592 }
 0x35e   : > { %v594_v18 = vsub.f32 %v588_v6, %v593_v17 }
 0x360   : > { %v595_v19 = vmul.f32 1.442695, %v594_v18 }
 0x362   : > { %909 = vpow2.f32 %v595_v19 }
 0x363   : > { %911 = vrcp.f32 %v534_v26 }
 0x365   : > { %v602_v20 = vpop.permute.xlu2 %601 }
 0x366   : > { %v607_v21 = vsel %vm414_vm3, %v602_v20, 0 }
 0x367   : > { %616 = vmatpush.bf16.msra.mxu0 %v607_v21 }
 0x368   : > { %v910_v22 = vpop.eup %909 }
 0x369   : > { %v600_v23 = vpack.c.bf16 %v910_v22, %v910_v22  ;;  %v597_v24 = vsel %vm378_vm2, %v910_v22, 0.0  ;;  %v912_v27 = vpop.eup %911 }
 0x36a   : > { %598 = vadd.xlane.f32.xlu0 %v597_v24  ;;  %v558_v28 = vmul.f32 %v912_v27, %v553_v9 }
 0x36b   : > { %798 = vmatmul.msk.bf16.vlgmr.msra.gmra.mxu0 %vm378_vm2, %v600_v23 }
 0x372   : > { %405 = vadd.xlane.f32.xlu0 %v404_v25 }
 0x386   : > { %560 = vrot.lane.b32.xlu0 %v558_v28, %s1109_s24  ;;  %s1025_s24 = scalar_lea.hbm %s1024_s15, 8 }
 0x387   : > { %p1026_p1 = scmp.ne.s32.totalorder %s1024_s15, %s1025_s24  ;;  %p1031_p10 = scmp.lt.s32.totalorder %s1029_s17, %s1025_s24 }
 0x389   : > { %p1027_p3 = pnand %p1026_p1, %p1216_p0  ;;  %p1032_p12 = por %p1031_p10, %p1030_p9 }
 0x38b   : > { %p1028_p8 = pneg %p1027_p3 }
 0x38d   : > { %p1033_p13 = pnand %p1032_p12, %p1028_p8 }
 0x3cd   : > { %v469_v29 = vpop.xlane.xlu0 %468 }
 0x3ce   : > { %913 = vrcp.f32 %v469_v29 }
 0x3d4   : > { %v914_v30 = vpop.eup %913 }
 0x3d8   : > { %v488_v31 = vpop.f32.mrf.mxu0 }
 0x3d9   : > { %v493_v32 = vmul.f32 %v914_v30, %v488_v31 }
 0x3db   : > { %495 = vrot.lane.b32.xlu2 %v493_v32, %s1110_s7 }
 0x3dd   : > { %v599_v33 = vpop.xlane.xlu0 %598 }
 0x3de   : > { %915 = vrcp.f32 %v599_v33 }
 0x3e0   : > { %v490_v34 = vpop.f32.mrf.mxu0 }
 0x3e4   : > { %v916_v36 = vpop.eup %915 }
 0x3e5   : > { %v406_v35 = vpop.xlane.xlu0 %405 }
 0x3e6   : > { %917 = vrcp.f32 %v406_v35 }
 0x3e8   : > { %v618_v37 = vpop.f32.mrf.mxu0 }
 0x3e9   : > { %v623_v38 = vmul.f32 %v916_v36, %v618_v37 }
 0x3eb   : > { %625 = vrot.lane.b32.xlu2 %v623_v38, %s1111_s29 }
 0x3ec   : > { %v918_v39 = vpop.eup %917 }
 0x3ed   : > { %v432_v40 = vmul.f32 %v918_v39, %v1287_v63 }
 0x3ef   : > { %433 = vst.msk [vmem:[#allocation3] sm:$0xff] %vm378_vm2, %v432_v40 }
 0x3f0   : > { %v620_v41 = vpop.f32.mrf.mxu0 }
 0x3f8   : > { %v561_v49 = vpop.permute.xlu0 %560 }
 0x435   : > { %v496_v48 = vpop.permute.xlu2 %495 }
 0x436   : > { %499 = vst.msk [vmem:[#allocation3] sm:$0xff] %vm498_vm5, %v496_v48 }
 0x437   : > { %564 = vst.msk [vmem:[#allocation3] sm:$0xff] %vm563_vm6, %v561_v49 }
 0x445   : > { %v626_v50 = vpop.permute.xlu2 %625 }
 0x446   : > { %629 = vst.msk [vmem:[#allocation3] sm:$0xff] %vm628_vm7, %v626_v50 }
 0x44d   : > { %v630_v51 = vld [vmem:[#allocation3] sm:$0xff] }
 0x44e   : > { %v631_v52 = vpack.c.bf16 %v630_v51, %v630_v51 }
 0x450   : > { %799 = vmatmul.msk.bf16.vlgmr.msra.gmra.mxu1 %vm316_vm0, %v631_v52 }
 0x4cd   : > { %v654_v54 = vpop.f32.mrf.mxu1 }
 0x4ce   : > { %v655_v55 = vadd.f32 %v902_v53, %v654_v54 }
 0x4d0   : > { %658 = vst.msk [vmem:[%s288_s11] sm:$0xff] %vm316_vm0, %v655_v55 }
 0x4d1   : > { %1036 = shalt.err (!%p1033_p13)
}
 0x4d2   : > { %814 = dma.vmem_to_hbm [thread:$0]  (%p1216_p0), %s674_s12, 128, %s676_s13, %s660_s21  }
 0x4d5   : > { %v656_v56 = vpop.f32.mrf.mxu1 }
 0x4d6 PF: > { %s687_s16 = sand.u32 1, %s1075_s18   ;;  %p828_p2 = pnand %p781_p6, %p1223_p5 }
 0x4d7   : > { %s688_s6 = scalar_lea.sflag [#allocation6], %s687_s16 }
 0x4d8   : > { %p829_p4 = pneg %p828_p2 }
 0x4da   : > { %1070 = dma.done.wait (%p829_p4), %s688_s6, 128  }
 0x4db   : > { %1072 = vsyncadd (%p829_p4), %s688_s6, 4294967168  ;;  %s22_s23 = sadd.s32 1, %s1095_s23   ;;  %s1356_s18 = smov %s1079_s19 }
 0x4dc   : > { %p19_p7 = scmp.ge.s32.totalorder %s22_s23, 4   ;;  %s1357_s19 = smov %s1083_s20 }
 0x4dd   : > { %s1358_s20 = smov %s1221_s28  ;;  %s1359_s21 = smov %s1091_s22 }
 0x4de   : > { %s1360_s22 = smov %s1362_s14  ;;  %21 = sbr.rel (!%p19_p7) target bundleno = 7 (0x7), region = 98 }
 0x4e3   :  { %694 = vsyncpa [#allocation5], 1 }
 0x4e4   :  { %696 = vsyncpa [#allocation5 + $0x1], 1 }
 0x4e5   :  { %697 = vsyncpa [#allocation8], 1 }
 0x4e6   :  { %698 = vsyncpa [#allocation6], 1 }
 0x4e7   :  { %700 = vsyncpa [#allocation6 + $0x1], 1 }

</bundles_post_ra>
